<compile_context>
chip_gen: v7x
topology: tpu7x:2x2x1
jax: 0.10.0
libtpu: 0.0.40
codegen_flags: <defaults>
</compile_context>

<pallas_src>
import functools

import jax
import jax.numpy as jnp
from jax.experimental import pallas as pl
from jax.experimental.pallas import tpu as pltpu

KERNEL_SIZE = 5
PADDING = 2


def _make_kernel(*, cin, cin_p, cout, tl, nt, hw, cdtype, use_halo):
    """Builds the per-step kernel body (all sizes are Python statics)."""
    pad_rows = cin_p - cin

    def _pad_channels(a, width):
        if pad_rows == 0:
            return a
        return jnp.concatenate([a, jnp.zeros((pad_rows, width), a.dtype)], axis=0)

    def _fill_rhs_rolled(rhs_ref, cur, lh, rh):
        # Tap k holds x shifted by d = k - PADDING.  Interior lanes come from a lane
        # roll of the current tile (XLU); the <=2 wrapped lanes of each shifted tap
        # are fixed with a 128-wide select against the rolled neighbour halo.
        lane = jax.lax.broadcasted_iota(jnp.int32, (cin_p, hw), 1)
        for k in range(KERNEL_SIZE):
            d = k - PADDING
            base = k * cin_p
            if d == 0:
                rhs_ref[base:base + cin_p, :] = cur.astype(cdtype)
                continue
            rolled = pltpu.roll(cur, shift=(-d) % tl, axis=1)
            if d < 0:
                halo_roll = pltpu.roll(lh, shift=(-d) % hw, axis=1)
                edge = jnp.where(lane < -d, halo_roll, rolled[:, :hw])
                if hw == tl:
                    rhs_ref[base:base + cin_p, :] = edge.astype(cdtype)
                else:
                    rhs_ref[base:base + cin_p, :] = rolled.astype(cdtype)
                    rhs_ref[base:base + cin_p, :hw] = edge.astype(cdtype)
            else:
                halo_roll = pltpu.roll(rh, shift=(-d) % hw, axis=1)
                edge = jnp.where(lane >= hw - d, halo_roll, rolled[:, tl - hw:])
                if hw == tl:
                    rhs_ref[base:base + cin_p, :] = edge.astype(cdtype)
                else:
                    rhs_ref[base:base + cin_p, :] = rolled.astype(cdtype)
                    rhs_ref[base:base + cin_p, tl - hw:] = edge.astype(cdtype)

    def _fill_rhs_ragged(rhs_ref, cur):
        # Fallback for L % 128 != 0 (single tile, zero halos): zero-padded window
        # plus static slices.  Perf is irrelevant at these sizes.
        zpad = jnp.zeros((cin_p, PADDING), cur.dtype)
        window = jnp.concatenate([zpad, cur, zpad], axis=1)        # (cin_p, tl + 4)
        for k in range(KERNEL_SIZE):
            rhs_ref[k * cin_p:(k + 1) * cin_p, :] = window[:, k:k + tl].astype(cdtype)

    def _matmul_epilogue(w_ref, b_ref, o_ref, rhs_ref):
        acc = jnp.dot(w_ref[...], rhs_ref[...],
                      preferred_element_type=jnp.float32)          # (cout_p, tl)
        acc = acc + b_ref[...]                                     # f32 epilogue
        o_ref[0] = jnp.maximum(acc[:cout, :], 0.0).astype(o_ref.dtype)

    if use_halo:
        def kernel(x_ref, lh_ref, rh_ref, w_ref, b_ref, o_ref, rhs_ref):
            s = pl.program_id(1)
            cur = _pad_channels(x_ref[0], tl)                      # (cin_p, tl)
            # Zero the halos at the row boundaries (== conv zero padding).
            lh = lh_ref[0] * (s > 0).astype(lh_ref.dtype)
            rh = rh_ref[0] * (s < nt - 1).astype(rh_ref.dtype)
            lh = _pad_channels(lh, hw)
            rh = _pad_channels(rh, hw)
            _fill_rhs_rolled(rhs_ref, cur, lh, rh)
            _matmul_epilogue(w_ref, b_ref, o_ref, rhs_ref)
    else:
        def kernel(x_ref, w_ref, b_ref, o_ref, rhs_ref):
            cur = _pad_channels(x_ref[0], tl)
            _fill_rhs_ragged(rhs_ref, cur)
            _matmul_epilogue(w_ref, b_ref, o_ref, rhs_ref)

    return kernel


def _pick_tile(length, cin, cout, cin_p, cbytes, max_tile_l):
    """Largest 128-multiple L tile that divides L and fits a ~10 MiB VMEM budget."""
    if length % 128 != 0:
        # TODO(synk): ragged L (not a multiple of 128) falls back to a single tile;
        # tiling it would need a masked final-tile path.
        return length
    per_lane = (2 * cin * 4                      # double-buffered f32 input tile
                + 2 * cout * 4                   # double-buffered f32 output tile
                + KERNEL_SIZE * cin_p * cbytes   # im2col rhs scratch
                + 2 * cin_p * cbytes)            # roll / channel-pad temps
    budget = 10 * 1024 * 1024                    # safe on v5e(16M)/v6e(32M)/v7x(32M) scoped defaults
    cap = max(128, (budget // per_lane) // 128 * 128)
    if max_tile_l is not None:
        cap = min(cap, max(128, (max_tile_l // 128) * 128))
    if length <= cap:
        return length
    nblk = length // 128
    for blocks in range(cap // 128, 0, -1):
        if nblk % blocks == 0:
            return 128 * blocks
    return 128


@functools.partial(jax.jit, static_argnames=("compute_dtype", "max_tile_l"))
def conv1d_relu(x_ncl, weight, bias, *, compute_dtype=jnp.float32, max_tile_l=None):
    """x_ncl: (N, Cin, L) f32; weight: (Cout, Cin, 5); bias: (Cout,) -> (N, Cout, L) f32.

    compute_dtype: dtype of the matmul inputs (jnp.bfloat16 on v6e/v7x when
    compute-bound).  x stays f32 in HBM; the cast happens per tile inside the kernel,
    so the bf16 path adds no extra HBM pass.  Accumulation/bias/ReLU stay f32.
    """
    n, cin, length = x_ncl.shape
    cout = weight.shape[0]
    assert weight.shape == (cout, cin, KERNEL_SIZE)
    assert bias.shape == (cout,)

    cdtype = jnp.dtype(compute_dtype)
    cbytes = cdtype.itemsize
    cin_p = -(-cin // 8) * 8             # sublane-aligned tap blocks in the im2col rhs
    cout_p = -(-cout // 8) * 8           # sublane-aligned matmul lhs / result

    tl = _pick_tile(length, cin, cout, cin_p, cbytes, max_tile_l)
    nt = length // tl
    use_halo = (length % 128 == 0)
    hw = 128 if use_halo else length     # halo block width (lane-aligned when tiled)
    ntb = tl // hw                       # 128-blocks per L tile
    lb = length // hw                    # 128-blocks per row

    # im2col weight: (Cout, Cin, K) -> (Cout_p, K*Cin_p), column index = k*Cin_p + ci
    # (matches the rhs row order built in-kernel).  Trace-time reshape, tiny.
    # TODO(synk): for Cin >~ 256 add a Cin-contraction grid axis (K-tiled weight +
    # f32 accumulator scratch) instead of keeping the full weight resident.
    w_t = jnp.transpose(weight, (0, 2, 1))                        # (Cout, K, Cin)
    w_t = jnp.pad(w_t, ((0, cout_p - cout), (0, 0), (0, cin_p - cin)))
    w_im2col = w_t.reshape(cout_p, KERNEL_SIZE * cin_p).astype(cdtype)
    b_col = jnp.pad(bias.astype(jnp.float32), (0, cout_p - cout)).reshape(cout_p, 1)

    kernel = _make_kernel(cin=cin, cin_p=cin_p, cout=cout, tl=tl, nt=nt, hw=hw,
                          cdtype=cdtype, use_halo=use_halo)

    x_spec = pl.BlockSpec((1, cin, tl), lambda b, s: (b, 0, s))
    # TODO(synk): mark the resident weight/bias specs pipeline_mode=pl.Buffered(1)
    # once channel counts make their double-buffered copies matter for VMEM.
    w_spec = pl.BlockSpec((cout_p, KERNEL_SIZE * cin_p), lambda b, s: (0, 0))
    b_spec = pl.BlockSpec((cout_p, 1), lambda b, s: (0, 0))

    if use_halo:
        # Left halo = the 128-block just before this tile; right halo = the 128-block
        # just after it.  Indices are clamped at the row ends; kernel zero-masks them.
        lh_spec = pl.BlockSpec(
            (1, cin, hw), lambda b, s: (b, 0, jnp.maximum(s * ntb - 1, 0)))
        rh_spec = pl.BlockSpec(
            (1, cin, hw), lambda b, s: (b, 0, jnp.minimum((s + 1) * ntb, lb - 1)))
        in_specs = [x_spec, lh_spec, rh_spec, w_spec, b_spec]
        inputs = (x_ncl, x_ncl, x_ncl, w_im2col, b_col)
    else:
        in_specs = [x_spec, w_spec, b_spec]
        inputs = (x_ncl, w_im2col, b_col)

    out = pl.pallas_call(
        kernel,
        out_shape=jax.ShapeDtypeStruct((n, cout, length), jnp.float32),
        grid_spec=pltpu.PrefetchScalarGridSpec(
            num_scalar_prefetch=0,
            grid=(n, nt),
            in_specs=in_specs,
            out_specs=pl.BlockSpec((1, cout, tl), lambda b, s: (b, 0, s)),
            scratch_shapes=[pltpu.VMEM((KERNEL_SIZE * cin_p, tl), cdtype)],
        ),
        compiler_params=pltpu.CompilerParams(
            # No cross-step carry -> both axes parallel (v7x 2-TC sharding even for
            # small N); measured no-op on single-TC v5e/v6e.
            dimension_semantics=("parallel", "parallel")),
        cost_estimate=pl.CostEstimate(
            flops=2 * n * length * cout * cin * KERNEL_SIZE,
            transcendentals=0,
            bytes_accessed=4 * n * length * (cin + cout)
                           + 4 * cout_p * (KERNEL_SIZE * cin_p + 1)),
    )(*inputs)

    return out


def _reference_conv1d_relu(x_ncl, weight, bias):
    # Pure-JAX reference (lax conv) for a sanity check.
    y = jax.lax.conv_general_dilated(
        x_ncl, weight, window_strides=(1,), padding=((PADDING, PADDING),),
        dimension_numbers=("NCH", "OIH", "NCH"))
    return jnp.maximum(y + bias[None, :, None], 0.0)


if __name__ == "__main__":
    key = jax.random.PRNGKey(0)
    k_x, k_w, k_b, k_x2 = jax.random.split(key, 4)

    batch, in_channels, out_channels, length = 2, 4, 8, 16

    fan_in = in_channels * KERNEL_SIZE
    bound = fan_in ** -0.5
    weight = jax.random.uniform(
        k_w, (out_channels, in_channels, KERNEL_SIZE), jnp.float32,
        minval=-bound, maxval=bound)
    bias = jax.random.uniform(
        k_b, (out_channels,), jnp.float32, minval=-bound, maxval=bound)

    # Module-spec small shape (L=16 -> single-tile fallback path).
    x = jax.random.normal(k_x, (batch, in_channels, length), jnp.float32)
    ref = _reference_conv1d_relu(x, weight, bias)
    out = jax.block_until_ready(conv1d_relu(x, weight, bias))
    assert out.shape == (batch, out_channels, length)
    assert jnp.allclose(out, ref, atol=1e-5, rtol=1e-5), "small-L f32 mismatch"

    # Tiled + halo (roll) path: L = 256 forced into two 128-wide tiles.
    length2 = 256
    x2 = jax.random.normal(k_x2, (batch, in_channels, length2), jnp.float32)
    ref2 = _reference_conv1d_relu(x2, weight, bias)
    out2 = jax.block_until_ready(conv1d_relu(x2, weight, bias, max_tile_l=128))
    assert out2.shape == (batch, out_channels, length2)
    assert jnp.allclose(out2, ref2, atol=1e-5, rtol=1e-5), "tiled f32 mismatch"

    # bf16 matmul-input path (v6e/v7x): per-tile in-kernel cast, f32 epilogue.
    out_bf16 = jax.block_until_ready(
        conv1d_relu(x2, weight, bias, compute_dtype=jnp.bfloat16, max_tile_l=128))
    assert jnp.allclose(out_bf16, ref2, atol=1e-1, rtol=1e-1), "bf16 mismatch"

    print("KERNEL_OK")
</pallas_src>

<mosaic_0001>
module attributes {stable_mosaic.version = 11 : i64} {
  func.func @kernel(%arg0: i32, %arg1: i32, %arg2: memref<1x4x16xf32, #tpu.memory_space<vmem>>, %arg3: memref<8x40xf32, #tpu.memory_space<vmem>>, %arg4: memref<8x1xf32, #tpu.memory_space<vmem>>, %arg5: memref<1x8x16xf32, #tpu.memory_space<vmem>>, %arg6: memref<40x16xf32, #tpu.memory_space<vmem>>) attributes {dimension_semantics = [#tpu.dimension_semantics<parallel>, #tpu.dimension_semantics<parallel>], iteration_bounds = array<i64: 2, 1>, scalar_prefetch = 0 : i64, scratch_operands = 1 : i64, tpu.core_type = #tpu.core_type<tc>, window_params = [{transform_indices = @transform_0, window_bounds = array<i64: 1, 4, 16>}, {pipeline_mode = #tpu.pipeline_mode<synchronous>, transform_indices = @transform_1, window_bounds = array<i64: 8, 40>}, {pipeline_mode = #tpu.pipeline_mode<synchronous>, transform_indices = @transform_2, window_bounds = array<i64: 8, 1>}, {transform_indices = @transform_3, window_bounds = array<i64: 1, 8, 16>}]} {
    %c0 = arith.constant 0 : index
    %c0_0 = arith.constant 0 : index
    %c0_1 = arith.constant 0 : index
    %0 = vector.load %arg2[%c0, %c0_0, %c0_1] : memref<1x4x16xf32, #tpu.memory_space<vmem>>, vector<1x4x16xf32>
    %1 = vector.shape_cast %0 : vector<1x4x16xf32> to vector<4x16xf32>
    %cst = arith.constant 0.000000e+00 : f32
    %2 = vector.broadcast %cst : f32 to vector<4x16xf32>
    %3 = tpu.concatenate %1, %2 in 0 : vector<4x16xf32>, vector<4x16xf32> -> vector<8x16xf32>
    %cst_2 = arith.constant 0.000000e+00 : f32
    %4 = vector.broadcast %cst_2 : f32 to vector<8x2xf32>
    %5 = tpu.concatenate %4, %3, %4 in 1 : vector<8x2xf32>, vector<8x16xf32>, vector<8x2xf32> -> vector<8x20xf32>
    %6 = vector.extract_strided_slice %5 {offsets = [0, 0], sizes = [8, 16], strides = [1, 1]} : vector<8x20xf32> to vector<8x16xf32>
    %c0_3 = arith.constant 0 : index
    %c0_4 = arith.constant 0 : index
    %7 = vector.load %arg6[%c0_3, %c0_4] : memref<40x16xf32, #tpu.memory_space<vmem>>, vector<8x16xf32>
    tpu.vector_store %arg6[%c0_3, %c0_4], %6 {strides = array<i32>} : memref<40x16xf32, #tpu.memory_space<vmem>>, vector<8x16xf32>,
    %8 = vector.extract_strided_slice %5 {offsets = [0, 1], sizes = [8, 16], strides = [1, 1]} : vector<8x20xf32> to vector<8x16xf32>
    %c8 = arith.constant 8 : index
    %c0_5 = arith.constant 0 : index
    %9 = vector.load %arg6[%c8, %c0_5] : memref<40x16xf32, #tpu.memory_space<vmem>>, vector<8x16xf32>
    tpu.vector_store %arg6[%c8, %c0_5], %8 {strides = array<i32>} : memref<40x16xf32, #tpu.memory_space<vmem>>, vector<8x16xf32>,
    %10 = vector.extract_strided_slice %5 {offsets = [0, 2], sizes = [8, 16], strides = [1, 1]} : vector<8x20xf32> to vector<8x16xf32>
    %c16 = arith.constant 16 : index
    %c0_6 = arith.constant 0 : index
    %11 = vector.load %arg6[%c16, %c0_6] : memref<40x16xf32, #tpu.memory_space<vmem>>, vector<8x16xf32>
    tpu.vector_store %arg6[%c16, %c0_6], %10 {strides = array<i32>} : memref<40x16xf32, #tpu.memory_space<vmem>>, vector<8x16xf32>,
    %12 = vector.extract_strided_slice %5 {offsets = [0, 3], sizes = [8, 16], strides = [1, 1]} : vector<8x20xf32> to vector<8x16xf32>
    %c24 = arith.constant 24 : index
    %c0_7 = arith.constant 0 : index
    %13 = vector.load %arg6[%c24, %c0_7] : memref<40x16xf32, #tpu.memory_space<vmem>>, vector<8x16xf32>
    tpu.vector_store %arg6[%c24, %c0_7], %12 {strides = array<i32>} : memref<40x16xf32, #tpu.memory_space<vmem>>, vector<8x16xf32>,
    %14 = vector.extract_strided_slice %5 {offsets = [0, 4], sizes = [8, 16], strides = [1, 1]} : vector<8x20xf32> to vector<8x16xf32>
    %c32 = arith.constant 32 : index
    %c0_8 = arith.constant 0 : index
    %15 = vector.load %arg6[%c32, %c0_8] : memref<40x16xf32, #tpu.memory_space<vmem>>, vector<8x16xf32>
    tpu.vector_store %arg6[%c32, %c0_8], %14 {strides = array<i32>} : memref<40x16xf32, #tpu.memory_space<vmem>>, vector<8x16xf32>,
    %c0_9 = arith.constant 0 : index
    %c0_10 = arith.constant 0 : index
    %16 = vector.load %arg3[%c0_9, %c0_10] : memref<8x40xf32, #tpu.memory_space<vmem>>, vector<8x40xf32>
    %c0_11 = arith.constant 0 : index
    %c0_12 = arith.constant 0 : index
    %17 = vector.load %arg6[%c0_11, %c0_12] : memref<40x16xf32, #tpu.memory_space<vmem>>, vector<40x16xf32>
    %cst_13 = arith.constant dense<0.000000e+00> : vector<8x16xf32>
    %18 = tpu.matmul %16, %17, %cst_13 {dimension_numbers = #tpu.dot_dimension_numbers<[1], [0], [0], [1], [0, 0, 1, 1], [], []>} : vector<8x40xf32>, vector<40x16xf32>, vector<8x16xf32> -> vector<8x16xf32>
    %c0_14 = arith.constant 0 : index
    %c0_15 = arith.constant 0 : index
    %19 = vector.load %arg4[%c0_14, %c0_15] : memref<8x1xf32, #tpu.memory_space<vmem>>, vector<8x1xf32>
    %20 = vector.broadcast %19 : vector<8x1xf32> to vector<8x16xf32>
    %21 = arith.addf %18, %20 : vector<8x16xf32>
    %cst_16 = arith.constant 0.000000e+00 : f32
    %22 = vector.broadcast %cst_16 : f32 to vector<8x16xf32>
    %23 = arith.maximumf %21, %22 : vector<8x16xf32>
    %c0_17 = arith.constant 0 : index
    %c0_18 = arith.constant 0 : index
    %c0_19 = arith.constant 0 : index
    %24 = vector.load %arg5[%c0_17, %c0_18, %c0_19] : memref<1x8x16xf32, #tpu.memory_space<vmem>>, vector<1x8x16xf32>
    %25 = vector.shape_cast %24 : vector<1x8x16xf32> to vector<8x16xf32>
    %26 = vector.shape_cast %23 : vector<8x16xf32> to vector<1x8x16xf32>
    tpu.vector_store %arg5[%c0_17, %c0_18, %c0_19], %26 {strides = array<i32>} : memref<1x8x16xf32, #tpu.memory_space<vmem>>, vector<1x8x16xf32>,
    return
  }
  func.func @transform_0(%arg0: i32, %arg1: i32) -> (i32, i32, i32) {
    %c0_i32 = arith.constant 0 : i32
    %c0_i32_0 = arith.constant 0 : i32
    return %arg0, %c0_i32, %arg1 : i32, i32, i32
  }
  func.func @transform_1(%arg0: i32, %arg1: i32) -> (i32, i32) {
    %c0_i32 = arith.constant 0 : i32
    %c0_i32_0 = arith.constant 0 : i32
    %c0_i32_1 = arith.constant 0 : i32
    return %c0_i32, %c0_i32_0 : i32, i32
  }
  func.func @transform_2(%arg0: i32, %arg1: i32) -> (i32, i32) {
    %c0_i32 = arith.constant 0 : i32
    %c0_i32_0 = arith.constant 0 : i32
    %c0_i32_1 = arith.constant 0 : i32
    return %c0_i32, %c0_i32_0 : i32, i32
  }
  func.func @transform_3(%arg0: i32, %arg1: i32) -> (i32, i32, i32) {
    %c0_i32 = arith.constant 0 : i32
    %c0_i32_0 = arith.constant 0 : i32
    return %arg0, %c0_i32, %arg1 : i32, i32, i32
  }
}

</mosaic_0001>

<bundles_post_ra>
// kernel: conv1d_relu.1
= control target key start
LH: loop header
LB: loop body
LE: loop exit
PB: predicated region body
PF: predicated region fallthrough
CT: control target
= control target key end

     0   :  { %8 = vsyncpa [#allocation4], 0  ;;  %s732_s0 = inlined_call_operand.vmem [shape: f32[2,4,16], index: 0, kind: input, shape index: {}]   ;;  %s733_s1 = inlined_call_operand.vmem [shape: f32[8,40], index: 1, kind: input, shape index: {}]   ;;  %s734_s2 = inlined_call_operand.vmem [shape: f32[8,1], index: 2, kind: input, shape index: {}]   ;;  %s735_s3 = inlined_call_operand.hbm [shape: f32[2,8,16], index: 3, kind: output, shape index: {}]  }
   0x1   :  { %10 = vsyncpa [#allocation4 + $0x1], 0  ;;  %s608_s12 = smov 0   ;;  %s610_s13 = smov 0  }
   0x2   :  { %s612_s14 = smov 0   ;;  %s614_s15 = smov 0  }
   0x3   :  { %s616_s16 = smov 0   ;;  %s618_s17 = smov 0  }
   0x4 LB: > { %s395_s18 = sadd.s32 4294967295, %s576_s17   ;;  %s396_s19 = sadd.s32 4294967294, %s576_s17   ;;  %s576_s17 = sphi %s618_s17, %s16_s17   ;;  %s572_s16 = sphi %s616_s16, %s742_s16   ;;  %s568_s15 = sphi %s614_s15, %s741_s15   ;;  %s564_s14 = sphi %s612_s14, %s740_s14   ;;  %s560_s13 = sphi %s610_s13, %s739_s13   ;;  %s556_s12 = sphi %s608_s12, %s738_s12  }
   0x5   : > { %s28_s20 = sadd.s32 1, %s572_s16  ;;  %s107_s21 = sadd.s32 1, %s564_s14 }
   0x6   : > { %p30_p0 = scmp.ge.s32.totalorder %s28_s20, 2  ;;  %p117_p1 = scmp.ne.s32.totalorder %s564_s14, %s560_s13 }
   0x7   : > { %p118_p2 = scmp.eq.s32.totalorder %s395_s18, 1  ;;  %p123_p3 = scmp.ne.s32.totalorder %s560_s13, %s556_s12 }
   0x8   : > { %s744_s20 = smov (%p30_p0, %s28_s20), 0  ;;  %p124_p5 = scmp.eq.s32.totalorder %s396_s19, 1 }
   0x9   : > { %p648_p4 = por %p118_p2, %p117_p1  ;;  %s102_s23 = ssub.s32 %s572_s16, %s744_s20 }
   0xa   : > { %p399_p6 = scmp.ge.s32.totalorder %s576_s17, 1  ;;  %p105_p7 = scmp.eq.s32.totalorder %s102_s23, 0 }
   0xb   : > { %p655_p8 = por %p124_p5, %p123_p3  ;;  %p158_p9 = scmp.lt.s32.totalorder %s576_s17, 3 }
   0xc   : > { %s661_s25 = scalar_select %p105_p7, %s564_s14, %s107_s21  }
   0xd   : > { %p159_p10 = pnand %p399_p6, %p158_p9 }
   0xe   : > { %p184_p11 = scmp.lt.s32.totalorder (!%p159_p10), %s568_s15, 1  ;;  %vm192_vm0 = vcmask (!%p159_p10), 1043456   ;;  %s578_s4 = smov (!%p159_p10), 2   ;;  %v579_v2 = vmov (!%p159_p10), 0.0|0.0   ;;  %vm198_vm1 = vcmask (!%p159_p10), 15360   ;;  %vm200_vm2 = vcmask (!%p159_p10), 146432  }
   0xf   : > { %162 = sbr.rel (%p159_p10) target bundleno = 509 (0x1fd), region = 32  ;;  %426 = vmatprep.subr.bf16.mxu0 (!%p159_p10), %v579_v2  ;;  %vm202_vm3 = vcmask (!%p159_p10), 130048   ;;  %s580_s5 = smov (!%p159_p10), 126   ;;  %vm584_vm4 = vmmov (!%p159_p10), 0   ;;  %v585_v6 = vmov (!%p159_p10), 0.0   ;;  %v227_v7 = vld [vmem:[%s734_s2] sm:$0xff] (!%p159_p10) }
  0x10   : > { %s581_s6 = smov (!%p159_p10), 127   ;;  %s582_s7 = smov (!%p159_p10), 125   ;;  %423 = vmatprep.mubr.msk.f32.mxu0 (!%p159_p10), %vm584_vm4, %v585_v6  ;;  %v586_v8 = vmov (!%p159_p10), 0   ;;  %v221_v19 = vld [vmem:[%s733_s1] sm:$0xff] (!%p159_p10)  ;;  %vm233_vm5 = vcmask (!%p159_p10), 326656  }
  0x11   : > { %s583_s8 = smov (!%p159_p10), 124   ;;  %496 = vset.pattern.permute.xlu1 (!%p159_p10), %v586_v8  ;;  %497 = vset.pattern.permute.xlu0 (!%p159_p10), %v586_v8  ;;  %s181_s19 = sand.u32 (!%p159_p10), 1, %s560_s13  }
  0x12   : > { %s400_s21 = sshll.u32 (!%p159_p10), %s181_s19, 3  ;;  %s404_s23 = sshll.u32 (!%p159_p10), %s568_s15, 7 }
  0x16   : > { %s185_s26 = scalar_select %p184_p11, %s568_s15, 1 }
  0x17   : > { %s587_s15 = smov [#allocation3]  }
  0x18   : > { %s401_s27 = sshll.u32 %s185_s26, 2  ;;  %s183_s26 = scalar_lea.vmem [#allocation3], %s400_s21 }
  0x19   : > { %s190_s30 = scalar_lea.vmem %s732_s0, %s401_s27  ;;  %s324_s27 = sshll.u32 %s183_s26, 4  ;;  %s686_s27 = int_to_ptr.vmem [resolvable:$true] %s324_s27 }
  0x1a   : > { %v191_v0 = vld [vmem:[%s190_s30] sm:$0xf]  ;;  %s684_s30 = scalar_lea.hbm %s735_s3, %s404_s23 }
  0x1b   : > { %v193_v1 = vsel %vm192_vm0, %v191_v0, 0.0 }
  0x1c   : > { %195 = vrot.lane.b32.xlu0 %v193_v1, %s578_s4  ;;  %s310_s4 = scalar_lea.sflag [#allocation4], %s181_s19 }
  0x8e   : > { %v196_v3 = vpop.permute.xlu0 %195 }
  0x8f   : > { %v199_v4 = vsel %vm198_vm1, 0.0, %v196_v3 }
  0x90   : > { %v201_v5 = vsel %vm200_vm2, %v199_v4, 0.0 }
  0x91   : > { %203 = vst.msk [vmem:[#allocation2] sm:$0xff] %vm202_vm3, %v201_v5  ;;  %209 = vrot.lane.b32.xlu1 %v201_v5, %s580_s5  ;;  %205 = vrot.lane.b32.xlu0 %v201_v5, %s581_s6  ;;  %s498_s5 = scalar_lea.vmem %s686_s27, 128  ;;  %s502_s6 = sshll.u32 %s587_s15, 4  ;;  %s503_s6 = int_to_ptr.vmem [resolvable:$false] %s502_s6 }
  0x92   : > { %p499_p12 = scmp.ne.s32.totalorder %s686_s27, %s498_s5  ;;  %p505_p1 = scmp.lt.s32.totalorder %s686_s27, %s503_s6 }
  0x94   : > { %p500_p13 = pnand %p499_p12, %p648_p4 }
  0x95   : > { %213 = vrot.lane.b32.xlu1 %v201_v5, %s582_s7  ;;  %217 = vrot.lane.b32.xlu0 %v201_v5, %s583_s8  ;;  %s504_s7 = scalar_lea.vmem %s503_s6, 256 }
  0x96   : > { %p501_p0 = pneg %p500_p13  ;;  %p506_p2 = scmp.lt.s32.totalorder %s504_s7, %s498_s5 }
  0x98   : > { %v222_v13 = vld [vmem:[#allocation2] sm:$0xff]  ;;  %p507_p3 = por %p506_p2, %p505_p1 }
  0x99   : > { %230 = vperm.xlu1 %496, %v227_v7  }
  0x9a   : > { %p508_p5 = pnand %p507_p3, %p501_p0 }
 0x103   : > { %v210_v9 = vpop.permute.xlu1 %209  ;;  %v206_v10 = vpop.permute.xlu0 %205 }
 0x104   : > { %212 = vst.msk [vmem:[#allocation2 + $0x10] sm:$0xff] %vm202_vm3, %v210_v9  ;;  %208 = vst.msk [vmem:[#allocation2 + $0x8] sm:$0xff] %vm202_vm3, %v206_v10 }
 0x107   : > { %v214_v11 = vpop.permute.xlu1 %213  ;;  %v218_v12 = vpop.permute.xlu0 %217 }
 0x108   : > { %216 = vst.msk [vmem:[#allocation2 + $0x18] sm:$0xff] %vm202_vm3, %v214_v11  ;;  %220 = vst.msk [vmem:[#allocation2 + $0x20] sm:$0xff] %vm202_vm3, %v218_v12 }
 0x10b   : > { %v223_v14 = vld [vmem:[#allocation2 + $0x8] sm:$0xff]  ;;  %v224_v16 = vld [vmem:[#allocation2 + $0x10] sm:$0xff] }
 0x10c   : > { %v427_v15 = vpack.c.bf16 %v223_v14, %v222_v13 }
 0x10e   : > { %428 = vmatpush3.bf16.msra.mxu0 %v427_v15 }
 0x10f   : > { %429 = vmatprep.subr.bf16.mxu0 %v579_v2  ;;  %v225_v17 = vld [vmem:[#allocation2 + $0x18] sm:$0xff]  ;;  %v226_v20 = vld [vmem:[#allocation2 + $0x20] sm:$0xff] }
 0x110   : > { %v430_v18 = vpack.c.bf16 %v225_v17, %v224_v16 }
 0x112   : > { %431 = vmatpush3.bf16.msra.mxu0 %v430_v18 }
 0x113   : > { %421 = vmatprep.subr.mxu0 %v585_v6 }
 0x116   : > { %422 = vmatpush3.msra.mxu0 %v226_v20 }
 0x117   : > { %424 = vmatmul.mubr.msk.f32.vlgmr.msra.gmra.mrb[0].mxu0 %vm233_vm5, %v221_v19 }
 0x118   : > { %v231_v21 = vpop.permute.xlu1 %230 }
 0x1ea   : > { %v303_v22 = vpop.f32.mrb[0].mxu0 }
 0x1eb   : > { %v304_v23 = vadd.f32 %v303_v22, %v231_v21  ;;  %v425_v24 = vpop.f32.mrb[1].mxu0 }
 0x1ed   : > { %v307_v25 = vmax.f32 %v304_v23, 0.0 }
 0x1ef   : > { %308 = vst.msk [vmem:[%s183_s26] sm:$0xff] %vm202_vm3, %v307_v25 }
 0x1f0   : > { %511 = shalt.err (!%p508_p5)
}
 0x1f1   : > { %s512_s8 = scalar_lea.hbm %s684_s30, 128  ;;  %s516_s11 = scalar_lea.hbm %s735_s3, 256 }
 0x1f2   : > { %p513_p6 = scmp.ne.s32.totalorder %s684_s30, %s512_s8  ;;  %p517_p10 = scmp.lt.u32.totalorder %s684_s30, %s735_s3 }
 0x1f3   : > { %p518_p11 = scmp.lt.u32.totalorder %s516_s11, %s512_s8  ;;  %p520_p13 = scmp.lt.u32.totalorder %s512_s8, %s684_s30 }
 0x1f4   : > { %p514_p7 = pnand %p513_p6, %p648_p4 }
 0x1f5   : > { %p519_p12 = por %p518_p11, %p517_p10 }
 0x1f6   : > { %p515_p9 = pneg %p514_p7 }
 0x1f7   : > { %p521_p0 = por %p520_p13, %p519_p12 }
 0x1f9   : > { %p522_p1 = pnand %p521_p0, %p515_p9 }
 0x1fb   : > { %525 = shalt.err (!%p522_p1)
}
 0x1fc   : > { %432 = dma.vmem_to_hbm [thread:$0]  (%p648_p4), %s686_s27, 128, %s684_s30, %s310_s4  }
 0x1fd PF: > { %p438_p2 = scmp.ge.s32.totalorder %s576_s17, 2  ;;  %s336_s21 = sand.u32 1, %s556_s12  }
 0x1fe   : > { %s337_s23 = scalar_lea.sflag [#allocation4], %s336_s21 }
 0x1ff   : > { %p435_p3 = pnand %p438_p2, %p655_p8 }
 0x201   : > { %551 = dma.done.wait (!%p435_p3), %s337_s23, 128  }
 0x202   : > { %553 = vsyncadd (!%p435_p3), %s337_s23, 4294967168  ;;  %s16_s17 = sadd.s32 1, %s576_s17   ;;  %s738_s12 = smov %s560_s13 }
 0x203   : > { %p13_p5 = scmp.ge.s32.totalorder %s16_s17, 4   ;;  %s739_s13 = smov %s564_s14 }
 0x204   : > { %s740_s14 = smov %s661_s25  ;;  %s741_s15 = smov %s572_s16 }
 0x205   : > { %s742_s16 = smov %s744_s20  ;;  %15 = sbr.rel (!%p13_p5) target bundleno = 4 (0x4), region = 67 }
 0x20c   :  { %342 = vsyncpa [#allocation4], 1 }
 0x20d   :  { %344 = vsyncpa [#allocation4 + $0x1], 1 }

</bundles_post_ra>
